<compile_context>
chip_gen: v5e
topology: v5e:2x2
jax: 0.10.0
libtpu: 0.0.40
codegen_flags: <defaults>
</compile_context>

<pallas_src>
import functools

import jax
import jax.numpy as jnp
from jax.experimental import pallas as pl
from jax.experimental.pallas import tpu as pltpu

# Synthetic env dims (e.g. CartPole-v1): obs dim 4, 2 discrete actions.
N_STATES = 4
N_ACTIONS = 2
HIDDEN = 512

_LANE = 128      # lane width (output padded to a multiple of this)
_SUBLANE = 8     # f32 sublane count (batch padded to a multiple of this)
_MAX_TM = 1024   # largest batch tile (keeps VMEM bounded on v7x too)


def _round_up(x: int, m: int) -> int:
    return ((x + m - 1) // m) * m


def net_kernel(x_ref, w1_ref, b1_ref, w2_ref, b2_ref, o_ref):
    """One batch tile: fc1 (VPU FMAs) + ReLU + out (MXU) + bias, fused."""
    x = x_ref[...]                                   # (TM, N_STATES)
    w1 = w1_ref[...]                                 # (N_STATES, HIDDEN)

    # fc1 as N_STATES broadcast-FMAs on the VPU: K=4 is <4% of the MXU
    # contraction dim, so a jnp.dot here would mostly pay systolic fill.
    h = b1_ref[...] + x[:, 0:1] * w1[0:1, :]         # (TM, HIDDEN)
    for k in range(1, N_STATES):                     # static unroll (K=4)
        h = h + x[:, k:k + 1] * w1[k:k + 1, :]
    h = jnp.maximum(h, 0.0)                          # ReLU (f32 on VPU)

    # out: (TM, HIDDEN) @ (HIDDEN, N_OUT_PAD) on the MXU, f32 accumulate.
    # TODO(synk): for replay-size batches, casting h/w2 to bf16 (keeping
    # preferred_element_type=f32) ~3x's MXU throughput on v6e/v7x.
    out = jnp.dot(h, w2_ref[...], preferred_element_type=jnp.float32)
    out = out + b2_ref[...]                          # broadcast (1, N_OUT_PAD)
    o_ref[...] = out.astype(o_ref.dtype)             # lane-dense (TM, 128k)


@functools.partial(jax.jit, static_argnames=())
def net_forward(x, w1, b1, w2, b2):
    """Forward pass of `Net`.

    x : (B, N_STATES) f32
    w1: (N_STATES, HIDDEN)   b1: (1, HIDDEN)
    w2: (HIDDEN, N_ACTIONS)  b2: (1, N_ACTIONS)
    returns (B, N_ACTIONS) f32 Q-values.
    """
    B = x.shape[0]
    n_out = w2.shape[1]

    # --- pad shapes to hardware-friendly sizes (cheap, fused under jit) ---
    n_out_pad = _round_up(n_out, _LANE)              # lane-dense output
    b_pad = _round_up(B, _SUBLANE)                   # fill f32 sublanes
    tm = min(b_pad, _MAX_TM)                         # batch tile
    b_pad = _round_up(b_pad, tm)                     # grid divides evenly

    x_p = jnp.pad(x, ((0, b_pad - B), (0, 0))) if b_pad != B else x
    w2_p = jnp.pad(w2, ((0, 0), (0, n_out_pad - n_out)))
    b2_p = jnp.pad(b2, ((0, 0), (0, n_out_pad - n_out)))

    grid = (b_pad // tm,)

    cost = pl.CostEstimate(
        flops=2 * b_pad * (N_STATES * HIDDEN + HIDDEN * n_out_pad),
        transcendentals=0,
        bytes_accessed=4 * (x_p.size + w1.size + b1.size
                            + w2_p.size + b2_p.size + b_pad * n_out_pad),
    )

    out_padded = pl.pallas_call(
        net_kernel,
        out_shape=jax.ShapeDtypeStruct((b_pad, n_out_pad), jnp.float32),
        grid_spec=pltpu.PrefetchScalarGridSpec(
            num_scalar_prefetch=0,
            grid=grid,
            in_specs=[
                # x: tiled over batch, double-buffered by the pipeline.
                pl.BlockSpec((tm, N_STATES), lambda i: (i, 0)),
                # weights / biases: VMEM-resident across the whole grid.
                pl.BlockSpec((N_STATES, HIDDEN), lambda i: (0, 0)),
                pl.BlockSpec((1, HIDDEN), lambda i: (0, 0)),
                pl.BlockSpec((HIDDEN, n_out_pad), lambda i: (0, 0)),
                pl.BlockSpec((1, n_out_pad), lambda i: (0, 0)),
            ],
            out_specs=pl.BlockSpec((tm, n_out_pad), lambda i: (i, 0)),
        ),
        compiler_params=pltpu.CompilerParams(
            # batch axis is independent -> shards across v7x's 2 TCs.
            dimension_semantics=("parallel",),
        ),
        cost_estimate=cost,
    )(x_p, w1, b1, w2_p, b2_p)

    return out_padded[:B, :n_out]


def init_params(key):
    """Match the PyTorch init: weights ~ Normal(0, 0.1); biases use the
    default nn.Linear init (Uniform(-1/sqrt(fan_in), 1/sqrt(fan_in)))."""
    k1, k2, k3, k4 = jax.random.split(key, 4)
    # Stored directly in (in, out) layout (== transpose of torch's (out, in)).
    w1 = 0.1 * jax.random.normal(k1, (N_STATES, HIDDEN), dtype=jnp.float32)
    w2 = 0.1 * jax.random.normal(k2, (HIDDEN, N_ACTIONS), dtype=jnp.float32)
    bound1 = 1.0 / jnp.sqrt(jnp.float32(N_STATES))
    bound2 = 1.0 / jnp.sqrt(jnp.float32(HIDDEN))
    b1 = jax.random.uniform(k3, (1, HIDDEN), jnp.float32, -bound1, bound1)
    b2 = jax.random.uniform(k4, (1, N_ACTIONS), jnp.float32, -bound2, bound2)
    return w1, b1, w2, b2


if __name__ == "__main__":
    key = jax.random.PRNGKey(0)
    pkey, xkey = jax.random.split(key)
    w1, b1, w2, b2 = init_params(pkey)

    # Small inference-shaped batch (odd on purpose to exercise padding).
    B = 2
    x = jax.random.normal(xkey, (B, N_STATES), dtype=jnp.float32)

    actions_value = net_forward(x, w1, b1, w2, b2)
    jax.block_until_ready(actions_value)

    # Reference check against plain JAX (same math as the torch forward).
    ref = jnp.maximum(x @ w1 + b1, 0.0) @ w2 + b2
    assert actions_value.shape == (B, N_ACTIONS)
    assert jnp.allclose(actions_value, ref, atol=1e-5, rtol=1e-5)

    # Also exercise the tiled-grid path with a replay-size batch.
    xb = jax.random.normal(jax.random.PRNGKey(1), (300, N_STATES), jnp.float32)
    qv = net_forward(xb, w1, b1, w2, b2)
    jax.block_until_ready(qv)
    refb = jnp.maximum(xb @ w1 + b1, 0.0) @ w2 + b2
    assert qv.shape == (300, N_ACTIONS)
    assert jnp.allclose(qv, refb, atol=1e-4, rtol=1e-4)

    print("KERNEL_OK")
</pallas_src>

<mosaic_0001>
module attributes {stable_mosaic.version = 11 : i64} {
  func.func @net_kernel(%arg0: i32, %arg1: memref<8x4xf32, #tpu.memory_space<vmem>>, %arg2: memref<4x512xf32, #tpu.memory_space<vmem>>, %arg3: memref<1x512xf32, #tpu.memory_space<vmem>>, %arg4: memref<512x128xf32, #tpu.memory_space<vmem>>, %arg5: memref<1x128xf32, #tpu.memory_space<vmem>>, %arg6: memref<8x128xf32, #tpu.memory_space<vmem>>) attributes {dimension_semantics = [#tpu.dimension_semantics<parallel>], iteration_bounds = array<i64: 1>, scalar_prefetch = 0 : i64, scratch_operands = 0 : i64, tpu.core_type = #tpu.core_type<tc>, window_params = [{transform_indices = @transform_0, window_bounds = array<i64: 8, 4>}, {pipeline_mode = #tpu.pipeline_mode<synchronous>, transform_indices = @transform_1, window_bounds = array<i64: 4, 512>}, {pipeline_mode = #tpu.pipeline_mode<synchronous>, transform_indices = @transform_2, window_bounds = array<i64: 1, 512>}, {pipeline_mode = #tpu.pipeline_mode<synchronous>, transform_indices = @transform_3, window_bounds = array<i64: 512, 128>}, {pipeline_mode = #tpu.pipeline_mode<synchronous>, transform_indices = @transform_4, window_bounds = array<i64: 1, 128>}, {transform_indices = @transform_5, window_bounds = array<i64: 8, 128>}]} {
    %c0 = arith.constant 0 : index
    %c0_0 = arith.constant 0 : index
    %0 = vector.load %arg1[%c0, %c0_0] : memref<8x4xf32, #tpu.memory_space<vmem>>, vector<8x4xf32>
    %c0_1 = arith.constant 0 : index
    %c0_2 = arith.constant 0 : index
    %1 = vector.load %arg2[%c0_1, %c0_2] : memref<4x512xf32, #tpu.memory_space<vmem>>, vector<4x512xf32>
    %c0_3 = arith.constant 0 : index
    %c0_4 = arith.constant 0 : index
    %2 = vector.load %arg3[%c0_3, %c0_4] : memref<1x512xf32, #tpu.memory_space<vmem>>, vector<1x512xf32>
    %3 = vector.extract_strided_slice %0 {offsets = [0, 0], sizes = [8, 1], strides = [1, 1]} : vector<8x4xf32> to vector<8x1xf32>
    %4 = vector.extract_strided_slice %1 {offsets = [0, 0], sizes = [1, 512], strides = [1, 1]} : vector<4x512xf32> to vector<1x512xf32>
    %5 = vector.broadcast %3 : vector<8x1xf32> to vector<8x512xf32>
    %6 = vector.broadcast %4 : vector<1x512xf32> to vector<8x512xf32>
    %7 = arith.mulf %5, %6 : vector<8x512xf32>
    %8 = vector.broadcast %2 : vector<1x512xf32> to vector<8x512xf32>
    %9 = arith.addf %8, %7 : vector<8x512xf32>
    %10 = vector.extract_strided_slice %0 {offsets = [0, 1], sizes = [8, 1], strides = [1, 1]} : vector<8x4xf32> to vector<8x1xf32>
    %11 = vector.extract_strided_slice %1 {offsets = [1, 0], sizes = [1, 512], strides = [1, 1]} : vector<4x512xf32> to vector<1x512xf32>
    %12 = vector.broadcast %10 : vector<8x1xf32> to vector<8x512xf32>
    %13 = vector.broadcast %11 : vector<1x512xf32> to vector<8x512xf32>
    %14 = arith.mulf %12, %13 : vector<8x512xf32>
    %15 = arith.addf %9, %14 : vector<8x512xf32>
    %16 = vector.extract_strided_slice %0 {offsets = [0, 2], sizes = [8, 1], strides = [1, 1]} : vector<8x4xf32> to vector<8x1xf32>
    %17 = vector.extract_strided_slice %1 {offsets = [2, 0], sizes = [1, 512], strides = [1, 1]} : vector<4x512xf32> to vector<1x512xf32>
    %18 = vector.broadcast %16 : vector<8x1xf32> to vector<8x512xf32>
    %19 = vector.broadcast %17 : vector<1x512xf32> to vector<8x512xf32>
    %20 = arith.mulf %18, %19 : vector<8x512xf32>
    %21 = arith.addf %15, %20 : vector<8x512xf32>
    %22 = vector.extract_strided_slice %0 {offsets = [0, 3], sizes = [8, 1], strides = [1, 1]} : vector<8x4xf32> to vector<8x1xf32>
    %23 = vector.extract_strided_slice %1 {offsets = [3, 0], sizes = [1, 512], strides = [1, 1]} : vector<4x512xf32> to vector<1x512xf32>
    %24 = vector.broadcast %22 : vector<8x1xf32> to vector<8x512xf32>
    %25 = vector.broadcast %23 : vector<1x512xf32> to vector<8x512xf32>
    %26 = arith.mulf %24, %25 : vector<8x512xf32>
    %27 = arith.addf %21, %26 : vector<8x512xf32>
    %cst = arith.constant 0.000000e+00 : f32
    %28 = vector.broadcast %cst : f32 to vector<8x512xf32>
    %29 = arith.maximumf %27, %28 : vector<8x512xf32>
    %c0_5 = arith.constant 0 : index
    %c0_6 = arith.constant 0 : index
    %30 = vector.load %arg4[%c0_5, %c0_6] : memref<512x128xf32, #tpu.memory_space<vmem>>, vector<512x128xf32>
    %cst_7 = arith.constant dense<0.000000e+00> : vector<8x128xf32>
    %31 = tpu.matmul %29, %30, %cst_7 {dimension_numbers = #tpu.dot_dimension_numbers<[1], [0], [0], [1], [0, 0, 1, 1], [], []>} : vector<8x512xf32>, vector<512x128xf32>, vector<8x128xf32> -> vector<8x128xf32>
    %c0_8 = arith.constant 0 : index
    %c0_9 = arith.constant 0 : index
    %32 = vector.load %arg5[%c0_8, %c0_9] : memref<1x128xf32, #tpu.memory_space<vmem>>, vector<1x128xf32>
    %33 = vector.broadcast %32 : vector<1x128xf32> to vector<8x128xf32>
    %34 = arith.addf %31, %33 : vector<8x128xf32>
    %c0_10 = arith.constant 0 : index
    %c0_11 = arith.constant 0 : index
    %35 = vector.load %arg6[%c0_10, %c0_11] : memref<8x128xf32, #tpu.memory_space<vmem>>, vector<8x128xf32>
    tpu.vector_store %arg6[%c0_10, %c0_11], %34 {strides = array<i32>} : memref<8x128xf32, #tpu.memory_space<vmem>>, vector<8x128xf32>,
    return
  }
  func.func @transform_0(%arg0: i32) -> (i32, i32) {
    %c0_i32 = arith.constant 0 : i32
    %c0_i32_0 = arith.constant 0 : i32
    return %arg0, %c0_i32 : i32, i32
  }
  func.func @transform_1(%arg0: i32) -> (i32, i32) {
    %c0_i32 = arith.constant 0 : i32
    %c0_i32_0 = arith.constant 0 : i32
    %c0_i32_1 = arith.constant 0 : i32
    return %c0_i32, %c0_i32_0 : i32, i32
  }
  func.func @transform_2(%arg0: i32) -> (i32, i32) {
    %c0_i32 = arith.constant 0 : i32
    %c0_i32_0 = arith.constant 0 : i32
    %c0_i32_1 = arith.constant 0 : i32
    return %c0_i32, %c0_i32_0 : i32, i32
  }
  func.func @transform_3(%arg0: i32) -> (i32, i32) {
    %c0_i32 = arith.constant 0 : i32
    %c0_i32_0 = arith.constant 0 : i32
    %c0_i32_1 = arith.constant 0 : i32
    return %c0_i32, %c0_i32_0 : i32, i32
  }
  func.func @transform_4(%arg0: i32) -> (i32, i32) {
    %c0_i32 = arith.constant 0 : i32
    %c0_i32_0 = arith.constant 0 : i32
    %c0_i32_1 = arith.constant 0 : i32
    return %c0_i32, %c0_i32_0 : i32, i32
  }
  func.func @transform_5(%arg0: i32) -> (i32, i32) {
    %c0_i32 = arith.constant 0 : i32
    %c0_i32_0 = arith.constant 0 : i32
    return %arg0, %c0_i32 : i32, i32
  }
}

</mosaic_0001>

<bundles_post_ra>
// kernel: net_forward.1
= control target key start
LH: loop header
LB: loop body
LE: loop exit
PB: predicated region body
PF: predicated region fallthrough
CT: control target
= control target key end

     0   :  { %v299_v0 = vmov 0   ;;  %v300_v2 = vmov 2   ;;  %v301_v19 = vmov 1   ;;  %v302_v20 = vmov 3   ;;  %s543_s0 = inlined_call_operand.vmem [shape: f32[8,4], index: 0, kind: input, shape index: {}]   ;;  %s544_s3 = inlined_call_operand.vmem [shape: f32[512,128], index: 3, kind: input, shape index: {}]   ;;  %s545_s4 = inlined_call_operand.vmem [shape: f32[1,128], index: 4, kind: input, shape index: {}]   ;;  %s546_s1 = inlined_call_operand.vmem [shape: f32[4,512], index: 1, kind: input, shape index: {}]   ;;  %s547_s2 = inlined_call_operand.vmem [shape: f32[1,512], index: 2, kind: input, shape index: {}]   ;;  %s548_s5 = inlined_call_operand.vmem [shape: f32[8,128], index: 5, kind: output, shape index: {}]  }
   0x1   :  { %293 = vset.pattern.permute.xlu0 %v299_v0  ;;  %v20_v1 = vld [vmem:[%s543_s0] sm:$0xff]  ;;  %295 = vset.pattern.permute.xlu1 %v300_v2  ;;  %v151_v3 = vld [vmem:[%s544_s3 + $0x78] sm:$0xff]  ;;  %v150_v7 = vld [vmem:[%s544_s3 + $0x70] sm:$0xff] }
   0x2   :  { %v167_v4 = vld [vmem:[%s544_s3 + $0xf8] sm:$0xff]  ;;  %26 = vperm.xlu0 %293, %v20_v1   ;;  %85 = vperm.xlu1 %295, %v20_v1   ;;  %v166_v8 = vld [vmem:[%s544_s3 + $0xf0] sm:$0xff]  ;;  %v149_v11 = vld [vmem:[%s544_s3 + $0x68] sm:$0xff] }
   0x3   :  { %v183_v5 = vld [vmem:[%s544_s3 + $0x178] sm:$0xff]  ;;  %204 = vmatpush.msra.mxu0 %v151_v3  ;;  %224 = vmatpush.msra.mxu1 %v167_v4  ;;  %v182_v9 = vld [vmem:[%s544_s3 + $0x170] sm:$0xff]  ;;  %v165_v12 = vld [vmem:[%s544_s3 + $0xe8] sm:$0xff] }
   0x4   :  { %v199_v6 = vld [vmem:[%s544_s3 + $0x1f8] sm:$0xff]  ;;  %v198_v10 = vld [vmem:[%s544_s3 + $0x1f0] sm:$0xff]  ;;  %244 = vmatpush.msra.mxu2 %v183_v5  ;;  %v181_v13 = vld [vmem:[%s544_s3 + $0x168] sm:$0xff] }
   0x5   :  { %264 = vmatpush.msra.mxu3 %v199_v6  ;;  %205 = vmatpush.msra.mxu0 %v150_v7  ;;  %v197_v14 = vld [vmem:[%s544_s3 + $0x1e8] sm:$0xff]  ;;  %v148_v15 = vld [vmem:[%s544_s3 + $0x60] sm:$0xff]  ;;  %v147_v21 = vld [vmem:[%s544_s3 + $0x58] sm:$0xff] }
   0x6   :  { %225 = vmatpush.msra.mxu1 %v166_v8  ;;  %245 = vmatpush.msra.mxu2 %v182_v9  ;;  %v164_v16 = vld [vmem:[%s544_s3 + $0xe0] sm:$0xff]  ;;  %v163_v22 = vld [vmem:[%s544_s3 + $0xd8] sm:$0xff]  ;;  %v146_v25 = vld [vmem:[%s544_s3 + $0x50] sm:$0xff] }
   0x7   :  { %265 = vmatpush.msra.mxu3 %v198_v10  ;;  %206 = vmatpush.msra.mxu0 %v149_v11  ;;  %v180_v17 = vld [vmem:[%s544_s3 + $0x160] sm:$0xff]  ;;  %v179_v23 = vld [vmem:[%s544_s3 + $0x158] sm:$0xff]  ;;  %v162_v26 = vld [vmem:[%s544_s3 + $0xd0] sm:$0xff] }
   0x8   :  { %226 = vmatpush.msra.mxu1 %v165_v12  ;;  %246 = vmatpush.msra.mxu2 %v181_v13  ;;  %v196_v18 = vld [vmem:[%s544_s3 + $0x1e0] sm:$0xff]  ;;  %v195_v24 = vld [vmem:[%s544_s3 + $0x1d8] sm:$0xff]  ;;  %v178_v27 = vld [vmem:[%s544_s3 + $0x150] sm:$0xff] }
   0x9   :  { %266 = vmatpush.msra.mxu3 %v197_v14  ;;  %207 = vmatpush.msra.mxu0 %v148_v15  ;;  %v194_v28 = vld [vmem:[%s544_s3 + $0x1d0] sm:$0xff]  ;;  %v145_v29 = vld [vmem:[%s544_s3 + $0x48] sm:$0xff]  ;;  %v144_v33 = vld [vmem:[%s544_s3 + $0x40] sm:$0xff] }
   0xa   :  { %227 = vmatpush.msra.mxu1 %v164_v16  ;;  %294 = vset.pattern.permute.xlu0 %v301_v19  ;;  %v161_v30 = vld [vmem:[%s544_s3 + $0xc8] sm:$0xff]  ;;  %v160_v34 = vld [vmem:[%s544_s3 + $0xc0] sm:$0xff]  ;;  %v143_v37 = vld [vmem:[%s544_s3 + $0x38] sm:$0xff] }
   0xb   :  { %296 = vset.pattern.permute.xlu1 %v302_v20  ;;  %61 = vperm.xlu0 %294, %v20_v1   ;;  %v177_v31 = vld [vmem:[%s544_s3 + $0x148] sm:$0xff]  ;;  %v176_v35 = vld [vmem:[%s544_s3 + $0x140] sm:$0xff]  ;;  %v159_v38 = vld [vmem:[%s544_s3 + $0xb8] sm:$0xff] }
   0xc   :  { %109 = vperm.xlu1 %296, %v20_v1   ;;  %247 = vmatpush.msra.mxu2 %v180_v17  ;;  %v193_v32 = vld [vmem:[%s544_s3 + $0x1c8] sm:$0xff]  ;;  %v192_v36 = vld [vmem:[%s544_s3 + $0x1c0] sm:$0xff]  ;;  %v175_v39 = vld [vmem:[%s544_s3 + $0x138] sm:$0xff] }
   0xd   :  { %267 = vmatpush.msra.mxu3 %v196_v18  ;;  %208 = vmatpush.msra.mxu0 %v147_v21  ;;  %v191_v40 = vld [vmem:[%s544_s3 + $0x1b8] sm:$0xff]  ;;  %v142_v41 = vld [vmem:[%s544_s3 + $0x30] sm:$0xff]  ;;  %v141_v45 = vld [vmem:[%s544_s3 + $0x28] sm:$0xff] }
   0xe   :  { %228 = vmatpush.msra.mxu1 %v163_v22  ;;  %248 = vmatpush.msra.mxu2 %v179_v23  ;;  %v158_v42 = vld [vmem:[%s544_s3 + $0xb0] sm:$0xff]  ;;  %v157_v46 = vld [vmem:[%s544_s3 + $0xa8] sm:$0xff]  ;;  %v140_v49 = vld [vmem:[%s544_s3 + $0x20] sm:$0xff] }
   0xf   :  { %268 = vmatpush.msra.mxu3 %v195_v24  ;;  %209 = vmatpush.msra.mxu0 %v146_v25  ;;  %v174_v43 = vld [vmem:[%s544_s3 + $0x130] sm:$0xff]  ;;  %v173_v47 = vld [vmem:[%s544_s3 + $0x128] sm:$0xff]  ;;  %v156_v50 = vld [vmem:[%s544_s3 + $0xa0] sm:$0xff] }
  0x10   :  { %229 = vmatpush.msra.mxu1 %v162_v26  ;;  %249 = vmatpush.msra.mxu2 %v178_v27  ;;  %v190_v44 = vld [vmem:[%s544_s3 + $0x1b0] sm:$0xff]  ;;  %v189_v48 = vld [vmem:[%s544_s3 + $0x1a8] sm:$0xff]  ;;  %v172_v51 = vld [vmem:[%s544_s3 + $0x120] sm:$0xff] }
  0x11   :  { %269 = vmatpush.msra.mxu3 %v194_v28  ;;  %210 = vmatpush.msra.mxu0 %v145_v29  ;;  %v188_v52 = vld [vmem:[%s544_s3 + $0x1a0] sm:$0xff]  ;;  %v139_v53 = vld [vmem:[%s544_s3 + $0x18] sm:$0xff]  ;;  %v138_v57 = vld [vmem:[%s544_s3 + $0x10] sm:$0xff] }
  0x12   :  { %230 = vmatpush.msra.mxu1 %v161_v30  ;;  %250 = vmatpush.msra.mxu2 %v177_v31  ;;  %v155_v54 = vld [vmem:[%s544_s3 + $0x98] sm:$0xff]  ;;  %v154_v58 = vld [vmem:[%s544_s3 + $0x90] sm:$0xff]  ;;  %v137_v61 = vld [vmem:[%s544_s3 + $0x8] sm:$0xff] }
  0x13   :  { %297 = vset.pattern.permute.xlu0 %v302_v20  ;;  %270 = vmatpush.msra.mxu3 %v193_v32  ;;  %v171_v55 = vld [vmem:[%s544_s3 + $0x118] sm:$0xff]  ;;  %v170_v59 = vld [vmem:[%s544_s3 + $0x110] sm:$0xff]  ;;  %v153_v62 = vld [vmem:[%s544_s3 + $0x88] sm:$0xff] }
  0x14   :  { %211 = vmatpush.msra.mxu0 %v144_v33  ;;  %231 = vmatpush.msra.mxu1 %v160_v34  ;;  %v187_v56 = vld [vmem:[%s544_s3 + $0x198] sm:$0xff]  ;;  %v186_v60 = vld [vmem:[%s544_s3 + $0x190] sm:$0xff]  ;;  %v169_v63 = vld [vmem:[%s544_s3 + $0x108] sm:$0xff] }
  0x15   :  { %251 = vmatpush.msra.mxu2 %v176_v35  ;;  %271 = vmatpush.msra.mxu3 %v192_v36  ;;  %v185_v0 = vld [vmem:[%s544_s3 + $0x188] sm:$0xff]  ;;  %v136_v1 = vld [vmem:[%s544_s3] sm:$0xff] }
  0x16   :  { %212 = vmatpush.msra.mxu0 %v143_v37  ;;  %232 = vmatpush.msra.mxu1 %v159_v38  ;;  %v152_v2 = vld [vmem:[%s544_s3 + $0x80] sm:$0xff]  ;;  %v22_v6 = vld [vmem:[%s546_s1 + $0x8] sm:$0xff] }
  0x17   :  { %252 = vmatpush.msra.mxu2 %v175_v39  ;;  %272 = vmatpush.msra.mxu3 %v191_v40  ;;  %v168_v3 = vld [vmem:[%s544_s3 + $0x100] sm:$0xff]  ;;  %v33_v9 = vperm.slane %v22_v6, 0  ;;  %v34_v10 = vperm.slane %v22_v6, 4  ;;  %v90_v13 = vperm.slane %v22_v6, 2  ;;  %v91_v14 = vperm.slane %v22_v6, 6 }
  0x18   :  { %213 = vmatpush.msra.mxu0 %v142_v41  ;;  %233 = vmatpush.msra.mxu1 %v158_v42  ;;  %v184_v4 = vld [vmem:[%s544_s3 + $0x180] sm:$0xff]  ;;  %v66_v28 = vperm.slane %v22_v6, 1  ;;  %v67_v29 = vperm.slane %v22_v6, 5  ;;  %v114_v32 = vperm.slane %v22_v6, 3  ;;  %v115_v33 = vperm.slane %v22_v6, 7 }
  0x19   :  { %253 = vmatpush.msra.mxu2 %v174_v43  ;;  %273 = vmatpush.msra.mxu3 %v190_v44  ;;  %v21_v5 = vld [vmem:[%s546_s1] sm:$0xff]  ;;  %v41_v17 = vperm.slane %v33_v9, 0  ;;  %v42_v18 = vperm.slane %v34_v10, 0  ;;  %v98_v23 = vperm.slane %v90_v13, 2  ;;  %v99_v24 = vperm.slane %v91_v14, 2 }
  0x1a   :  { %214 = vmatpush.msra.mxu0 %v141_v45  ;;  %234 = vmatpush.msra.mxu1 %v157_v46  ;;  %v31_v7 = vperm.slane %v21_v5, 0  ;;  %v32_v8 = vperm.slane %v21_v5, 4  ;;  %v88_v11 = vperm.slane %v21_v5, 2  ;;  %v89_v12 = vperm.slane %v21_v5, 6  ;;  %v23_v25 = vld [vmem:[%s547_s2] sm:$0xf] }
  0x1b   :  { %254 = vmatpush.msra.mxu2 %v173_v47  ;;  %274 = vmatpush.msra.mxu3 %v189_v48  ;;  %v64_v26 = vperm.slane %v21_v5, 1  ;;  %v65_v27 = vperm.slane %v21_v5, 5  ;;  %v112_v30 = vperm.slane %v21_v5, 3  ;;  %v113_v31 = vperm.slane %v21_v5, 7 }
  0x1c   :  { %215 = vmatpush.msra.mxu0 %v140_v49  ;;  %235 = vmatpush.msra.mxu1 %v156_v50  ;;  %v39_v15 = vperm.slane %v31_v7, 0  ;;  %v40_v16 = vperm.slane %v32_v8, 0  ;;  %v96_v21 = vperm.slane %v88_v11, 2  ;;  %v97_v22 = vperm.slane %v89_v12, 2 }
  0x1d   :  { %255 = vmatpush.msra.mxu2 %v172_v51  ;;  %275 = vmatpush.msra.mxu3 %v188_v52  ;;  %v48_v34 = vperm.slane %v23_v25, 0  ;;  %v49_v35 = vperm.slane %v23_v25, 1  ;;  %v50_v36 = vperm.slane %v23_v25, 2  ;;  %v51_v37 = vperm.slane %v23_v25, 3 }
  0x1e   :  { %216 = vmatpush.msra.mxu0 %v139_v53  ;;  %236 = vmatpush.msra.mxu1 %v155_v54  ;;  %v72_v42 = vperm.slane %v64_v26, 1  ;;  %v73_v43 = vperm.slane %v65_v27, 1  ;;  %v74_v44 = vperm.slane %v66_v28, 1  ;;  %v75_v45 = vperm.slane %v67_v29, 1 }
  0x1f   :  { %256 = vmatpush.msra.mxu2 %v171_v55  ;;  %276 = vmatpush.msra.mxu3 %v187_v56  ;;  %v120_v46 = vperm.slane %v112_v30, 3  ;;  %v121_v47 = vperm.slane %v113_v31, 3  ;;  %v122_v48 = vperm.slane %v114_v32, 3  ;;  %v123_v49 = vperm.slane %v115_v33, 3 }
  0x20   :  { %217 = vmatpush.msra.mxu0 %v138_v57  ;;  %237 = vmatpush.msra.mxu1 %v154_v58 }
  0x21   :  { %257 = vmatpush.msra.mxu2 %v170_v59  ;;  %277 = vmatpush.msra.mxu3 %v186_v60 }
  0x22   :  { %218 = vmatpush.msra.mxu0 %v137_v61  ;;  %238 = vmatpush.msra.mxu1 %v153_v62 }
  0x23   :  { %258 = vmatpush.msra.mxu2 %v169_v63  ;;  %278 = vmatpush.msra.mxu3 %v185_v0 }
  0x24   :  { %219 = vmatpush.msra.mxu0 %v136_v1  ;;  %239 = vmatpush.msra.mxu1 %v152_v2 }
  0x25   :  { %259 = vmatpush.msra.mxu2 %v168_v3  ;;  %279 = vmatpush.msra.mxu3 %v184_v4 }
  0x74   :  { %v27_v19 = vpop.permute.xlu0 %26  ;;  %v86_v20 = vpop.permute.xlu1 %85 }
  0x75   :  { %v43_v38 = vmul.f32 %v39_v15, %v27_v19  ;;  %v44_v39 = vmul.f32 %v40_v16, %v27_v19  ;;  %v45_v40 = vmul.f32 %v41_v17, %v27_v19  ;;  %v46_v41 = vmul.f32 %v42_v18, %v27_v19 }
  0x76   :  { %v100_v50 = vmul.f32 %v96_v21, %v86_v20  ;;  %v101_v51 = vmul.f32 %v97_v22, %v86_v20  ;;  %v102_v52 = vmul.f32 %v98_v23, %v86_v20  ;;  %v103_v53 = vmul.f32 %v99_v24, %v86_v20  ;;  %v298_v20 = vld [vmem:[%s545_s4] ss:$0 sm:$0xff] }
  0x77   :  { %v56_v54 = vadd.f32 %v48_v34, %v43_v38  ;;  %v57_v55 = vadd.f32 %v49_v35, %v44_v39  ;;  %v58_v56 = vadd.f32 %v50_v36, %v45_v40  ;;  %v59_v57 = vadd.f32 %v51_v37, %v46_v41 }
  0x7d   :  { %v62_v58 = vpop.permute.xlu0 %61 }
  0x7e   :  { %v110_v59 = vpop.permute.xlu1 %109  ;;  %v76_v60 = vmul.f32 %v72_v42, %v62_v58  ;;  %v77_v61 = vmul.f32 %v73_v43, %v62_v58  ;;  %v78_v62 = vmul.f32 %v74_v44, %v62_v58  ;;  %v79_v63 = vmul.f32 %v75_v45, %v62_v58 }
  0x7f   :  { %v124_v0 = vmul.f32 %v120_v46, %v110_v59  ;;  %v125_v1 = vmul.f32 %v121_v47, %v110_v59  ;;  %v126_v2 = vmul.f32 %v122_v48, %v110_v59  ;;  %v127_v3 = vmul.f32 %v123_v49, %v110_v59 }
  0x80   :  { %v80_v4 = vadd.f32 %v76_v60, %v56_v54  ;;  %v81_v5 = vadd.f32 %v77_v61, %v57_v55  ;;  %v82_v6 = vadd.f32 %v78_v62, %v58_v56  ;;  %v83_v7 = vadd.f32 %v79_v63, %v59_v57 }
  0x82   :  { %v104_v8 = vadd.f32 %v100_v50, %v80_v4  ;;  %v105_v9 = vadd.f32 %v101_v51, %v81_v5  ;;  %v106_v10 = vadd.f32 %v102_v52, %v82_v6  ;;  %v107_v11 = vadd.f32 %v103_v53, %v83_v7 }
  0x84   :  { %v128_v12 = vadd.f32 %v124_v0, %v104_v8  ;;  %v129_v13 = vadd.f32 %v125_v1, %v105_v9  ;;  %v130_v14 = vadd.f32 %v126_v2, %v106_v10  ;;  %v131_v15 = vadd.f32 %v127_v3, %v107_v11 }
  0x86   :  { %v132_v16 = vmax.f32 %v128_v12, 0.0  ;;  %v133_v17 = vmax.f32 %v129_v13, 0.0  ;;  %v134_v18 = vmax.f32 %v130_v14, 0.0  ;;  %v135_v19 = vmax.f32 %v131_v15, 0.0 }
  0x88   :  { %220 = vmatmul.f32.vlgmr.msra.gmra.mxu0 %v132_v16  ;;  %240 = vmatmul.f32.vlgmr.msra.gmra.mxu1 %v133_v17 }
  0x89   :  { %260 = vmatmul.f32.vlgmr.msra.gmra.mxu2 %v134_v18  ;;  %280 = vmatmul.f32.vlgmr.msra.gmra.mxu3 %v135_v19 }
 0x105   :  { %v221_v21 = vpop.f32.mrf.mxu0  ;;  %v241_v23 = vpop.f32.mrf.mxu1 }
 0x106   :  { %v222_v22 = vadd.f32 %v298_v20, %v221_v21 }
 0x108   :  { %v242_v24 = vadd.f32 %v241_v23, %v222_v22 }
 0x10c   :  { %v261_v25 = vpop.f32.mrf.mxu2  ;;  %v281_v27 = vpop.f32.mrf.mxu3 }
 0x10d   :  { %v262_v26 = vadd.f32 %v261_v25, %v242_v24 }
 0x10f   :  { %v282_v28 = vadd.f32 %v281_v27, %v262_v26 }
 0x111   :  { %284 = vst [vmem:[%s548_s5] sm:$0xff] %v282_v28 }

</bundles_post_ra>
